<compile_context>
chip_gen: v5e
topology: v5e:2x2
jax: 0.10.0
libtpu: 0.0.40
codegen_flags: <defaults>
</compile_context>

<pallas_src>
import functools
import math

import jax
import jax.numpy as jnp
import numpy as np
from jax.experimental import pallas as pl
from jax.experimental.pallas import tpu as pltpu


def _round_up(n, m):
    return ((n + m - 1) // m) * m


def gru_seq_kernel(x_ref, wih_ref, whh_ref, bgi_ref, bhhn_ref, y_ref, *,
                   T, Bp, H, use_residual):
    """Whole-sequence single-layer GRU (PyTorch nn.GRU semantics).

    x_ref   : (T*Bp, F)  time-major input, batch padded to a sublane multiple
    wih_ref : (F, 3H)    W_ih^T, gate order [r | z | n] (PyTorch)
    whh_ref : (H, 3H)    W_hh^T
    bgi_ref : (1, 3H)    b_ih with b_hh folded into the r/z slices
    bhhn_ref: (1, H)     b_hh n-gate slice (must remain inside r * (...))
    y_ref   : (Bp, T*H)  lane-dense, batch-major output slab
    """
    x = x_ref[...]
    whh = whh_ref[...]
    bhh_n = bhhn_ref[...]

    # Hoisted input projection: one large MXU matmul covering all timesteps.
    gi = jnp.dot(x, wih_ref[...], preferred_element_type=jnp.float32) + bgi_ref[...]

    h = jnp.zeros((Bp, H), jnp.float32)
    outs = []
    # Serial recurrence. Static Python loop: T is small & static, and the
    # lane-dense concatenation below requires static per-step lane offsets.
    for t in range(T):
        lo = t * Bp
        gi_t = gi[lo:lo + Bp, :]
        gh = jnp.dot(h, whh, preferred_element_type=jnp.float32)
        # Fused r/z sigmoid: one EUP push over the first 2H lanes.
        rz = jax.nn.sigmoid(gi_t[:, :2 * H] + gh[:, :2 * H])
        r = rz[:, :H]
        z = rz[:, H:]
        n = jnp.tanh(gi_t[:, 2 * H:] + r * (gh[:, 2 * H:] + bhh_n))
        h = (1.0 - z) * n + z * h
        if use_residual:
            # Residual add does not feed the recurrence -> off the critical
            # path; it only flows into the final lane-dense store.
            outs.append(h + x[lo:lo + Bp, :])
        else:
            outs.append(h)

    # Single unmasked, lane-dense store of all timesteps.
    y_ref[...] = jnp.concatenate(outs, axis=-1)


def temporal_encoder_gru(x_btf, w_ih_t, w_hh_t, b_gi, b_hh_n, *, use_residual=True):
    """x_btf: (B, T, F) float32. Returns (B, T, H) float32 (batch-major)."""
    B, T, F = x_btf.shape
    H = w_hh_t.shape[0]

    # Time-major for the recurrence; pad batch to a sublane multiple so every
    # timestep's rows are tile-aligned and vreg sublanes are fully used.
    Bp = max(8, _round_up(B, 8))
    x_tbf = jnp.transpose(x_btf, (1, 0, 2))
    if Bp != B:
        x_tbf = jnp.pad(x_tbf, ((0, 0), (0, Bp - B), (0, 0)))
    x2d = x_tbf.reshape(T * Bp, F)          # layout-preserving (Bp % 8 == 0)

    kernel = functools.partial(
        gru_seq_kernel, T=T, Bp=Bp, H=H,
        use_residual=bool(use_residual and (H == F)))

    vmem = pl.BlockSpec(memory_space=pltpu.MemorySpace.VMEM)
    y = pl.pallas_call(
        kernel,
        out_shape=jax.ShapeDtypeStruct((Bp, T * H), jnp.float32),
        in_specs=[vmem, vmem, vmem, vmem, vmem],
        out_specs=vmem,
    )(x2d, w_ih_t, w_hh_t, b_gi, b_hh_n)

    # Kernel output is already batch-major: only a cheap reshape + slice.
    return y.reshape(Bp, T, H)[:B]


def gru_reference(x_tbf, w_ih, w_hh, b_ih, b_hh, use_residual=True):
    """Pure-JAX reference of TemporalEncoder (1 layer, unidirectional)."""
    T, B, F = x_tbf.shape
    H = w_hh.shape[1]

    def step(h, x_t):
        gi = x_t @ w_ih.T + b_ih
        gh = h @ w_hh.T + b_hh
        r = jax.nn.sigmoid(gi[:, :H] + gh[:, :H])
        z = jax.nn.sigmoid(gi[:, H:2 * H] + gh[:, H:2 * H])
        n = jnp.tanh(gi[:, 2 * H:] + r * gh[:, 2 * H:])
        h_new = (1.0 - z) * n + z * h
        return h_new, h_new

    h0 = jnp.zeros((B, H), jnp.float32)
    _, ys = jax.lax.scan(step, h0, x_tbf)
    if use_residual and H == F:
        ys = ys + x_tbf
    return ys


class VIBEDemoPallas:
    """Scaled-down VIBE_Demo (temporal_type='gru', n_layers=1, add_linear=False,
    bidirectional=False, use_residual=True). Hidden size == feature dim so the
    residual branch (original condition: dim == 2048) is exercised."""

    def __init__(self, seqlen, feat_dim=32, hidden_size=32, use_residual=True,
                 key=jax.random.PRNGKey(42)):
        self.seqlen = seqlen
        self.feat_dim = feat_dim
        self.hidden_size = hidden_size
        self.use_residual = use_residual
        H = hidden_size
        # PyTorch nn.GRU init: U(-1/sqrt(H), 1/sqrt(H)), deterministic here.
        k = 1.0 / math.sqrt(H)
        k0, k1, k2, k3 = jax.random.split(key, 4)
        self.w_ih = jax.random.uniform(k0, (3 * H, feat_dim), jnp.float32, -k, k)
        self.w_hh = jax.random.uniform(k1, (3 * H, H), jnp.float32, -k, k)
        self.b_ih = jax.random.uniform(k2, (3 * H,), jnp.float32, -k, k)
        self.b_hh = jax.random.uniform(k3, (3 * H,), jnp.float32, -k, k)
        # Precompute kernel-friendly layouts ONCE (not per call):
        self.w_ih_t = jnp.transpose(self.w_ih)                       # (F, 3H)
        self.w_hh_t = jnp.transpose(self.w_hh)                       # (H, 3H)
        b_gi = self.b_ih.at[:2 * H].add(self.b_hh[:2 * H])           # fold r/z biases
        self.b_gi = b_gi[None, :]                                    # (1, 3H)
        self.b_hh_n = self.b_hh[2 * H:][None, :]                     # (1, H)

    def __call__(self, inp):
        # inp: (batch, seqlen, nc, h, w)  -- NCHW frames per time step
        B, T, C, Hh, Ww = inp.shape
        # TODO(synk): hmr (SPIN ResNet-50) feature extractor and the SMPL Regressor
        # are external pretrained modules not defined in this file; features stand
        # in as the flattened frames (C*H*W == feat_dim), and the SMPL outputs
        # (theta/verts/kp_2d/kp_3d/rotmat) are not produced.
        feature = inp.reshape(B, T, -1).astype(jnp.float32)           # (B, T, F)
        # Kernel wrapper consumes (B, T, F) and emits (B, T, H) directly.
        return temporal_encoder_gru(feature, self.w_ih_t, self.w_hh_t,
                                    self.b_gi, self.b_hh_n,
                                    use_residual=self.use_residual)

    def reference(self, inp):
        B, T, _, _, _ = inp.shape
        feature = inp.reshape(B, T, -1).astype(jnp.float32)
        x = jnp.transpose(feature, (1, 0, 2))
        y = gru_reference(x, self.w_ih, self.w_hh, self.b_ih, self.b_hh,
                          use_residual=self.use_residual)
        return jnp.transpose(y, (1, 0, 2))


if __name__ == "__main__":
    # Small shapes: batch=4, seqlen=8, frames of (C=2, H=4, W=4) -> feat_dim = 32
    B, T, C, HI, WI = 4, 8, 2, 4, 4
    FEAT = C * HI * WI  # 32

    key = jax.random.PRNGKey(0)
    inp = jax.random.normal(key, (B, T, C, HI, WI), dtype=jnp.float32)

    model = VIBEDemoPallas(seqlen=T, feat_dim=FEAT, hidden_size=FEAT)

    out = jax.block_until_ready(model(inp))
    ref = jax.block_until_ready(model.reference(inp))

    assert out.shape == (B, T, FEAT), out.shape
    np.testing.assert_allclose(np.asarray(out), np.asarray(ref), rtol=1e-4, atol=1e-4)

    print("KERNEL_OK")
</pallas_src>

<mosaic_0001>
module attributes {stable_mosaic.version = 11 : i64} {
  func.func @gru_seq_kernel(%arg0: memref<64x32xf32, #tpu.memory_space<vmem>>, %arg1: memref<32x96xf32, #tpu.memory_space<vmem>>, %arg2: memref<32x96xf32, #tpu.memory_space<vmem>>, %arg3: memref<1x96xf32, #tpu.memory_space<vmem>>, %arg4: memref<1x32xf32, #tpu.memory_space<vmem>>, %arg5: memref<8x256xf32, #tpu.memory_space<vmem>>) attributes {dimension_semantics = [], scalar_prefetch = 0 : i64, scratch_operands = 0 : i64, tpu.core_type = #tpu.core_type<tc>} {
    %c0 = arith.constant 0 : index
    %c0_0 = arith.constant 0 : index
    %0 = vector.load %arg0[%c0, %c0_0] : memref<64x32xf32, #tpu.memory_space<vmem>>, vector<64x32xf32>
    %c0_1 = arith.constant 0 : index
    %c0_2 = arith.constant 0 : index
    %1 = vector.load %arg2[%c0_1, %c0_2] : memref<32x96xf32, #tpu.memory_space<vmem>>, vector<32x96xf32>
    %c0_3 = arith.constant 0 : index
    %c0_4 = arith.constant 0 : index
    %2 = vector.load %arg4[%c0_3, %c0_4] : memref<1x32xf32, #tpu.memory_space<vmem>>, vector<1x32xf32>
    %c0_5 = arith.constant 0 : index
    %c0_6 = arith.constant 0 : index
    %3 = vector.load %arg1[%c0_5, %c0_6] : memref<32x96xf32, #tpu.memory_space<vmem>>, vector<32x96xf32>
    %cst = arith.constant dense<0.000000e+00> : vector<64x96xf32>
    %4 = tpu.matmul %0, %3, %cst {dimension_numbers = #tpu.dot_dimension_numbers<[1], [0], [0], [1], [0, 0, 1, 1], [], []>} : vector<64x32xf32>, vector<32x96xf32>, vector<64x96xf32> -> vector<64x96xf32>
    %c0_7 = arith.constant 0 : index
    %c0_8 = arith.constant 0 : index
    %5 = vector.load %arg3[%c0_7, %c0_8] : memref<1x96xf32, #tpu.memory_space<vmem>>, vector<1x96xf32>
    %6 = vector.broadcast %5 : vector<1x96xf32> to vector<64x96xf32>
    %7 = arith.addf %4, %6 : vector<64x96xf32>
    %cst_9 = arith.constant 0.000000e+00 : f32
    %8 = vector.broadcast %cst_9 : f32 to vector<8x32xf32>
    %9 = vector.extract_strided_slice %7 {offsets = [0, 0], sizes = [8, 96], strides = [1, 1]} : vector<64x96xf32> to vector<8x96xf32>
    %cst_10 = arith.constant dense<0.000000e+00> : vector<8x96xf32>
    %10 = tpu.matmul %8, %1, %cst_10 {dimension_numbers = #tpu.dot_dimension_numbers<[1], [0], [0], [1], [0, 0, 1, 1], [], []>} : vector<8x32xf32>, vector<32x96xf32>, vector<8x96xf32> -> vector<8x96xf32>
    %11 = vector.extract_strided_slice %9 {offsets = [0, 0], sizes = [8, 64], strides = [1, 1]} : vector<8x96xf32> to vector<8x64xf32>
    %12 = vector.extract_strided_slice %10 {offsets = [0, 0], sizes = [8, 64], strides = [1, 1]} : vector<8x96xf32> to vector<8x64xf32>
    %13 = arith.addf %11, %12 : vector<8x64xf32>
    %14 = arith.negf %13 : vector<8x64xf32>
    %15 = math.exp %14 : vector<8x64xf32>
    %cst_11 = arith.constant 1.000000e+00 : f32
    %16 = vector.broadcast %cst_11 : f32 to vector<8x64xf32>
    %17 = arith.addf %16, %15 : vector<8x64xf32>
    %18 = arith.divf %16, %17 : vector<8x64xf32>
    %19 = vector.extract_strided_slice %18 {offsets = [0, 0], sizes = [8, 32], strides = [1, 1]} : vector<8x64xf32> to vector<8x32xf32>
    %20 = vector.extract_strided_slice %18 {offsets = [0, 32], sizes = [8, 32], strides = [1, 1]} : vector<8x64xf32> to vector<8x32xf32>
    %21 = vector.extract_strided_slice %9 {offsets = [0, 64], sizes = [8, 32], strides = [1, 1]} : vector<8x96xf32> to vector<8x32xf32>
    %22 = vector.extract_strided_slice %10 {offsets = [0, 64], sizes = [8, 32], strides = [1, 1]} : vector<8x96xf32> to vector<8x32xf32>
    %23 = vector.broadcast %2 : vector<1x32xf32> to vector<8x32xf32>
    %24 = arith.addf %22, %23 : vector<8x32xf32>
    %25 = arith.mulf %19, %24 : vector<8x32xf32>
    %26 = arith.addf %21, %25 : vector<8x32xf32>
    %27 = math.tanh %26 : vector<8x32xf32>
    %cst_12 = arith.constant 1.000000e+00 : f32
    %28 = vector.broadcast %cst_12 : f32 to vector<8x32xf32>
    %29 = arith.subf %28, %20 : vector<8x32xf32>
    %30 = arith.mulf %29, %27 : vector<8x32xf32>
    %31 = arith.mulf %20, %8 : vector<8x32xf32>
    %32 = arith.addf %30, %31 : vector<8x32xf32>
    %33 = vector.extract_strided_slice %0 {offsets = [0, 0], sizes = [8, 32], strides = [1, 1]} : vector<64x32xf32> to vector<8x32xf32>
    %34 = arith.addf %32, %33 : vector<8x32xf32>
    %35 = vector.extract_strided_slice %7 {offsets = [8, 0], sizes = [8, 96], strides = [1, 1]} : vector<64x96xf32> to vector<8x96xf32>
    %cst_13 = arith.constant dense<0.000000e+00> : vector<8x96xf32>
    %36 = tpu.matmul %32, %1, %cst_13 {dimension_numbers = #tpu.dot_dimension_numbers<[1], [0], [0], [1], [0, 0, 1, 1], [], []>} : vector<8x32xf32>, vector<32x96xf32>, vector<8x96xf32> -> vector<8x96xf32>
    %37 = vector.extract_strided_slice %35 {offsets = [0, 0], sizes = [8, 64], strides = [1, 1]} : vector<8x96xf32> to vector<8x64xf32>
    %38 = vector.extract_strided_slice %36 {offsets = [0, 0], sizes = [8, 64], strides = [1, 1]} : vector<8x96xf32> to vector<8x64xf32>
    %39 = arith.addf %37, %38 : vector<8x64xf32>
    %40 = arith.negf %39 : vector<8x64xf32>
    %41 = math.exp %40 : vector<8x64xf32>
    %cst_14 = arith.constant 1.000000e+00 : f32
    %42 = vector.broadcast %cst_14 : f32 to vector<8x64xf32>
    %43 = arith.addf %42, %41 : vector<8x64xf32>
    %44 = arith.divf %42, %43 : vector<8x64xf32>
    %45 = vector.extract_strided_slice %44 {offsets = [0, 0], sizes = [8, 32], strides = [1, 1]} : vector<8x64xf32> to vector<8x32xf32>
    %46 = vector.extract_strided_slice %44 {offsets = [0, 32], sizes = [8, 32], strides = [1, 1]} : vector<8x64xf32> to vector<8x32xf32>
    %47 = vector.extract_strided_slice %35 {offsets = [0, 64], sizes = [8, 32], strides = [1, 1]} : vector<8x96xf32> to vector<8x32xf32>
    %48 = vector.extract_strided_slice %36 {offsets = [0, 64], sizes = [8, 32], strides = [1, 1]} : vector<8x96xf32> to vector<8x32xf32>
    %49 = vector.broadcast %2 : vector<1x32xf32> to vector<8x32xf32>
    %50 = arith.addf %48, %49 : vector<8x32xf32>
    %51 = arith.mulf %45, %50 : vector<8x32xf32>
    %52 = arith.addf %47, %51 : vector<8x32xf32>
    %53 = math.tanh %52 : vector<8x32xf32>
    %cst_15 = arith.constant 1.000000e+00 : f32
    %54 = vector.broadcast %cst_15 : f32 to vector<8x32xf32>
    %55 = arith.subf %54, %46 : vector<8x32xf32>
    %56 = arith.mulf %55, %53 : vector<8x32xf32>
    %57 = arith.mulf %46, %32 : vector<8x32xf32>
    %58 = arith.addf %56, %57 : vector<8x32xf32>
    %59 = vector.extract_strided_slice %0 {offsets = [8, 0], sizes = [8, 32], strides = [1, 1]} : vector<64x32xf32> to vector<8x32xf32>
    %60 = arith.addf %58, %59 : vector<8x32xf32>
    %61 = vector.extract_strided_slice %7 {offsets = [16, 0], sizes = [8, 96], strides = [1, 1]} : vector<64x96xf32> to vector<8x96xf32>
    %cst_16 = arith.constant dense<0.000000e+00> : vector<8x96xf32>
    %62 = tpu.matmul %58, %1, %cst_16 {dimension_numbers = #tpu.dot_dimension_numbers<[1], [0], [0], [1], [0, 0, 1, 1], [], []>} : vector<8x32xf32>, vector<32x96xf32>, vector<8x96xf32> -> vector<8x96xf32>
    %63 = vector.extract_strided_slice %61 {offsets = [0, 0], sizes = [8, 64], strides = [1, 1]} : vector<8x96xf32> to vector<8x64xf32>
    %64 = vector.extract_strided_slice %62 {offsets = [0, 0], sizes = [8, 64], strides = [1, 1]} : vector<8x96xf32> to vector<8x64xf32>
    %65 = arith.addf %63, %64 : vector<8x64xf32>
    %66 = arith.negf %65 : vector<8x64xf32>
    %67 = math.exp %66 : vector<8x64xf32>
    %cst_17 = arith.constant 1.000000e+00 : f32
    %68 = vector.broadcast %cst_17 : f32 to vector<8x64xf32>
    %69 = arith.addf %68, %67 : vector<8x64xf32>
    %70 = arith.divf %68, %69 : vector<8x64xf32>
    %71 = vector.extract_strided_slice %70 {offsets = [0, 0], sizes = [8, 32], strides = [1, 1]} : vector<8x64xf32> to vector<8x32xf32>
    %72 = vector.extract_strided_slice %70 {offsets = [0, 32], sizes = [8, 32], strides = [1, 1]} : vector<8x64xf32> to vector<8x32xf32>
    %73 = vector.extract_strided_slice %61 {offsets = [0, 64], sizes = [8, 32], strides = [1, 1]} : vector<8x96xf32> to vector<8x32xf32>
    %74 = vector.extract_strided_slice %62 {offsets = [0, 64], sizes = [8, 32], strides = [1, 1]} : vector<8x96xf32> to vector<8x32xf32>
    %75 = vector.broadcast %2 : vector<1x32xf32> to vector<8x32xf32>
    %76 = arith.addf %74, %75 : vector<8x32xf32>
    %77 = arith.mulf %71, %76 : vector<8x32xf32>
    %78 = arith.addf %73, %77 : vector<8x32xf32>
    %79 = math.tanh %78 : vector<8x32xf32>
    %cst_18 = arith.constant 1.000000e+00 : f32
    %80 = vector.broadcast %cst_18 : f32 to vector<8x32xf32>
    %81 = arith.subf %80, %72 : vector<8x32xf32>
    %82 = arith.mulf %81, %79 : vector<8x32xf32>
    %83 = arith.mulf %72, %58 : vector<8x32xf32>
    %84 = arith.addf %82, %83 : vector<8x32xf32>
    %85 = vector.extract_strided_slice %0 {offsets = [16, 0], sizes = [8, 32], strides = [1, 1]} : vector<64x32xf32> to vector<8x32xf32>
    %86 = arith.addf %84, %85 : vector<8x32xf32>
    %87 = vector.extract_strided_slice %7 {offsets = [24, 0], sizes = [8, 96], strides = [1, 1]} : vector<64x96xf32> to vector<8x96xf32>
    %cst_19 = arith.constant dense<0.000000e+00> : vector<8x96xf32>
    %88 = tpu.matmul %84, %1, %cst_19 {dimension_numbers = #tpu.dot_dimension_numbers<[1], [0], [0], [1], [0, 0, 1, 1], [], []>} : vector<8x32xf32>, vector<32x96xf32>, vector<8x96xf32> -> vector<8x96xf32>
    %89 = vector.extract_strided_slice %87 {offsets = [0, 0], sizes = [8, 64], strides = [1, 1]} : vector<8x96xf32> to vector<8x64xf32>
    %90 = vector.extract_strided_slice %88 {offsets = [0, 0], sizes = [8, 64], strides = [1, 1]} : vector<8x96xf32> to vector<8x64xf32>
    %91 = arith.addf %89, %90 : vector<8x64xf32>
    %92 = arith.negf %91 : vector<8x64xf32>
    %93 = math.exp %92 : vector<8x64xf32>
    %cst_20 = arith.constant 1.000000e+00 : f32
    %94 = vector.broadcast %cst_20 : f32 to vector<8x64xf32>
    %95 = arith.addf %94, %93 : vector<8x64xf32>
    %96 = arith.divf %94, %95 : vector<8x64xf32>
    %97 = vector.extract_strided_slice %96 {offsets = [0, 0], sizes = [8, 32], strides = [1, 1]} : vector<8x64xf32> to vector<8x32xf32>
    %98 = vector.extract_strided_slice %96 {offsets = [0, 32], sizes = [8, 32], strides = [1, 1]} : vector<8x64xf32> to vector<8x32xf32>
    %99 = vector.extract_strided_slice %87 {offsets = [0, 64], sizes = [8, 32], strides = [1, 1]} : vector<8x96xf32> to vector<8x32xf32>
    %100 = vector.extract_strided_slice %88 {offsets = [0, 64], sizes = [8, 32], strides = [1, 1]} : vector<8x96xf32> to vector<8x32xf32>
    %101 = vector.broadcast %2 : vector<1x32xf32> to vector<8x32xf32>
    %102 = arith.addf %100, %101 : vector<8x32xf32>
    %103 = arith.mulf %97, %102 : vector<8x32xf32>
    %104 = arith.addf %99, %103 : vector<8x32xf32>
    %105 = math.tanh %104 : vector<8x32xf32>
    %cst_21 = arith.constant 1.000000e+00 : f32
    %106 = vector.broadcast %cst_21 : f32 to vector<8x32xf32>
    %107 = arith.subf %106, %98 : vector<8x32xf32>
    %108 = arith.mulf %107, %105 : vector<8x32xf32>
    %109 = arith.mulf %98, %84 : vector<8x32xf32>
    %110 = arith.addf %108, %109 : vector<8x32xf32>
    %111 = vector.extract_strided_slice %0 {offsets = [24, 0], sizes = [8, 32], strides = [1, 1]} : vector<64x32xf32> to vector<8x32xf32>
    %112 = arith.addf %110, %111 : vector<8x32xf32>
    %113 = vector.extract_strided_slice %7 {offsets = [32, 0], sizes = [8, 96], strides = [1, 1]} : vector<64x96xf32> to vector<8x96xf32>
    %cst_22 = arith.constant dense<0.000000e+00> : vector<8x96xf32>
    %114 = tpu.matmul %110, %1, %cst_22 {dimension_numbers = #tpu.dot_dimension_numbers<[1], [0], [0], [1], [0, 0, 1, 1], [], []>} : vector<8x32xf32>, vector<32x96xf32>, vector<8x96xf32> -> vector<8x96xf32>
    %115 = vector.extract_strided_slice %113 {offsets = [0, 0], sizes = [8, 64], strides = [1, 1]} : vector<8x96xf32> to vector<8x64xf32>
    %116 = vector.extract_strided_slice %114 {offsets = [0, 0], sizes = [8, 64], strides = [1, 1]} : vector<8x96xf32> to vector<8x64xf32>
    %117 = arith.addf %115, %116 : vector<8x64xf32>
    %118 = arith.negf %117 : vector<8x64xf32>
    %119 = math.exp %118 : vector<8x64xf32>
    %cst_23 = arith.constant 1.000000e+00 : f32
    %120 = vector.broadcast %cst_23 : f32 to vector<8x64xf32>
    %121 = arith.addf %120, %119 : vector<8x64xf32>
    %122 = arith.divf %120, %121 : vector<8x64xf32>
    %123 = vector.extract_strided_slice %122 {offsets = [0, 0], sizes = [8, 32], strides = [1, 1]} : vector<8x64xf32> to vector<8x32xf32>
    %124 = vector.extract_strided_slice %122 {offsets = [0, 32], sizes = [8, 32], strides = [1, 1]} : vector<8x64xf32> to vector<8x32xf32>
    %125 = vector.extract_strided_slice %113 {offsets = [0, 64], sizes = [8, 32], strides = [1, 1]} : vector<8x96xf32> to vector<8x32xf32>
    %126 = vector.extract_strided_slice %114 {offsets = [0, 64], sizes = [8, 32], strides = [1, 1]} : vector<8x96xf32> to vector<8x32xf32>
    %127 = vector.broadcast %2 : vector<1x32xf32> to vector<8x32xf32>
    %128 = arith.addf %126, %127 : vector<8x32xf32>
    %129 = arith.mulf %123, %128 : vector<8x32xf32>
    %130 = arith.addf %125, %129 : vector<8x32xf32>
    %131 = math.tanh %130 : vector<8x32xf32>
    %cst_24 = arith.constant 1.000000e+00 : f32
    %132 = vector.broadcast %cst_24 : f32 to vector<8x32xf32>
    %133 = arith.subf %132, %124 : vector<8x32xf32>
    %134 = arith.mulf %133, %131 : vector<8x32xf32>
    %135 = arith.mulf %124, %110 : vector<8x32xf32>
    %136 = arith.addf %134, %135 : vector<8x32xf32>
    %137 = vector.extract_strided_slice %0 {offsets = [32, 0], sizes = [8, 32], strides = [1, 1]} : vector<64x32xf32> to vector<8x32xf32>
    %138 = arith.addf %136, %137 : vector<8x32xf32>
    %139 = vector.extract_strided_slice %7 {offsets = [40, 0], sizes = [8, 96], strides = [1, 1]} : vector<64x96xf32> to vector<8x96xf32>
    %cst_25 = arith.constant dense<0.000000e+00> : vector<8x96xf32>
    %140 = tpu.matmul %136, %1, %cst_25 {dimension_numbers = #tpu.dot_dimension_numbers<[1], [0], [0], [1], [0, 0, 1, 1], [], []>} : vector<8x32xf32>, vector<32x96xf32>, vector<8x96xf32> -> vector<8x96xf32>
    %141 = vector.extract_strided_slice %139 {offsets = [0, 0], sizes = [8, 64], strides = [1, 1]} : vector<8x96xf32> to vector<8x64xf32>
    %142 = vector.extract_strided_slice %140 {offsets = [0, 0], sizes = [8, 64], strides = [1, 1]} : vector<8x96xf32> to vector<8x64xf32>
    %143 = arith.addf %141, %142 : vector<8x64xf32>
    %144 = arith.negf %143 : vector<8x64xf32>
    %145 = math.exp %144 : vector<8x64xf32>
    %cst_26 = arith.constant 1.000000e+00 : f32
    %146 = vector.broadcast %cst_26 : f32 to vector<8x64xf32>
    %147 = arith.addf %146, %145 : vector<8x64xf32>
    %148 = arith.divf %146, %147 : vector<8x64xf32>
    %149 = vector.extract_strided_slice %148 {offsets = [0, 0], sizes = [8, 32], strides = [1, 1]} : vector<8x64xf32> to vector<8x32xf32>
    %150 = vector.extract_strided_slice %148 {offsets = [0, 32], sizes = [8, 32], strides = [1, 1]} : vector<8x64xf32> to vector<8x32xf32>
    %151 = vector.extract_strided_slice %139 {offsets = [0, 64], sizes = [8, 32], strides = [1, 1]} : vector<8x96xf32> to vector<8x32xf32>
    %152 = vector.extract_strided_slice %140 {offsets = [0, 64], sizes = [8, 32], strides = [1, 1]} : vector<8x96xf32> to vector<8x32xf32>
    %153 = vector.broadcast %2 : vector<1x32xf32> to vector<8x32xf32>
    %154 = arith.addf %152, %153 : vector<8x32xf32>
    %155 = arith.mulf %149, %154 : vector<8x32xf32>
    %156 = arith.addf %151, %155 : vector<8x32xf32>
    %157 = math.tanh %156 : vector<8x32xf32>
    %cst_27 = arith.constant 1.000000e+00 : f32
    %158 = vector.broadcast %cst_27 : f32 to vector<8x32xf32>
    %159 = arith.subf %158, %150 : vector<8x32xf32>
    %160 = arith.mulf %159, %157 : vector<8x32xf32>
    %161 = arith.mulf %150, %136 : vector<8x32xf32>
    %162 = arith.addf %160, %161 : vector<8x32xf32>
    %163 = vector.extract_strided_slice %0 {offsets = [40, 0], sizes = [8, 32], strides = [1, 1]} : vector<64x32xf32> to vector<8x32xf32>
    %164 = arith.addf %162, %163 : vector<8x32xf32>
    %165 = vector.extract_strided_slice %7 {offsets = [48, 0], sizes = [8, 96], strides = [1, 1]} : vector<64x96xf32> to vector<8x96xf32>
    %cst_28 = arith.constant dense<0.000000e+00> : vector<8x96xf32>
    %166 = tpu.matmul %162, %1, %cst_28 {dimension_numbers = #tpu.dot_dimension_numbers<[1], [0], [0], [1], [0, 0, 1, 1], [], []>} : vector<8x32xf32>, vector<32x96xf32>, vector<8x96xf32> -> vector<8x96xf32>
    %167 = vector.extract_strided_slice %165 {offsets = [0, 0], sizes = [8, 64], strides = [1, 1]} : vector<8x96xf32> to vector<8x64xf32>
    %168 = vector.extract_strided_slice %166 {offsets = [0, 0], sizes = [8, 64], strides = [1, 1]} : vector<8x96xf32> to vector<8x64xf32>
    %169 = arith.addf %167, %168 : vector<8x64xf32>
    %170 = arith.negf %169 : vector<8x64xf32>
    %171 = math.exp %170 : vector<8x64xf32>
    %cst_29 = arith.constant 1.000000e+00 : f32
    %172 = vector.broadcast %cst_29 : f32 to vector<8x64xf32>
    %173 = arith.addf %172, %171 : vector<8x64xf32>
    %174 = arith.divf %172, %173 : vector<8x64xf32>
    %175 = vector.extract_strided_slice %174 {offsets = [0, 0], sizes = [8, 32], strides = [1, 1]} : vector<8x64xf32> to vector<8x32xf32>
    %176 = vector.extract_strided_slice %174 {offsets = [0, 32], sizes = [8, 32], strides = [1, 1]} : vector<8x64xf32> to vector<8x32xf32>
    %177 = vector.extract_strided_slice %165 {offsets = [0, 64], sizes = [8, 32], strides = [1, 1]} : vector<8x96xf32> to vector<8x32xf32>
    %178 = vector.extract_strided_slice %166 {offsets = [0, 64], sizes = [8, 32], strides = [1, 1]} : vector<8x96xf32> to vector<8x32xf32>
    %179 = vector.broadcast %2 : vector<1x32xf32> to vector<8x32xf32>
    %180 = arith.addf %178, %179 : vector<8x32xf32>
    %181 = arith.mulf %175, %180 : vector<8x32xf32>
    %182 = arith.addf %177, %181 : vector<8x32xf32>
    %183 = math.tanh %182 : vector<8x32xf32>
    %cst_30 = arith.constant 1.000000e+00 : f32
    %184 = vector.broadcast %cst_30 : f32 to vector<8x32xf32>
    %185 = arith.subf %184, %176 : vector<8x32xf32>
    %186 = arith.mulf %185, %183 : vector<8x32xf32>
    %187 = arith.mulf %176, %162 : vector<8x32xf32>
    %188 = arith.addf %186, %187 : vector<8x32xf32>
    %189 = vector.extract_strided_slice %0 {offsets = [48, 0], sizes = [8, 32], strides = [1, 1]} : vector<64x32xf32> to vector<8x32xf32>
    %190 = arith.addf %188, %189 : vector<8x32xf32>
    %191 = vector.extract_strided_slice %7 {offsets = [56, 0], sizes = [8, 96], strides = [1, 1]} : vector<64x96xf32> to vector<8x96xf32>
    %cst_31 = arith.constant dense<0.000000e+00> : vector<8x96xf32>
    %192 = tpu.matmul %188, %1, %cst_31 {dimension_numbers = #tpu.dot_dimension_numbers<[1], [0], [0], [1], [0, 0, 1, 1], [], []>} : vector<8x32xf32>, vector<32x96xf32>, vector<8x96xf32> -> vector<8x96xf32>
    %193 = vector.extract_strided_slice %191 {offsets = [0, 0], sizes = [8, 64], strides = [1, 1]} : vector<8x96xf32> to vector<8x64xf32>
    %194 = vector.extract_strided_slice %192 {offsets = [0, 0], sizes = [8, 64], strides = [1, 1]} : vector<8x96xf32> to vector<8x64xf32>
    %195 = arith.addf %193, %194 : vector<8x64xf32>
    %196 = arith.negf %195 : vector<8x64xf32>
    %197 = math.exp %196 : vector<8x64xf32>
    %cst_32 = arith.constant 1.000000e+00 : f32
    %198 = vector.broadcast %cst_32 : f32 to vector<8x64xf32>
    %199 = arith.addf %198, %197 : vector<8x64xf32>
    %200 = arith.divf %198, %199 : vector<8x64xf32>
    %201 = vector.extract_strided_slice %200 {offsets = [0, 0], sizes = [8, 32], strides = [1, 1]} : vector<8x64xf32> to vector<8x32xf32>
    %202 = vector.extract_strided_slice %200 {offsets = [0, 32], sizes = [8, 32], strides = [1, 1]} : vector<8x64xf32> to vector<8x32xf32>
    %203 = vector.extract_strided_slice %191 {offsets = [0, 64], sizes = [8, 32], strides = [1, 1]} : vector<8x96xf32> to vector<8x32xf32>
    %204 = vector.extract_strided_slice %192 {offsets = [0, 64], sizes = [8, 32], strides = [1, 1]} : vector<8x96xf32> to vector<8x32xf32>
    %205 = vector.broadcast %2 : vector<1x32xf32> to vector<8x32xf32>
    %206 = arith.addf %204, %205 : vector<8x32xf32>
    %207 = arith.mulf %201, %206 : vector<8x32xf32>
    %208 = arith.addf %203, %207 : vector<8x32xf32>
    %209 = math.tanh %208 : vector<8x32xf32>
    %cst_33 = arith.constant 1.000000e+00 : f32
    %210 = vector.broadcast %cst_33 : f32 to vector<8x32xf32>
    %211 = arith.subf %210, %202 : vector<8x32xf32>
    %212 = arith.mulf %211, %209 : vector<8x32xf32>
    %213 = arith.mulf %202, %188 : vector<8x32xf32>
    %214 = arith.addf %212, %213 : vector<8x32xf32>
    %215 = vector.extract_strided_slice %0 {offsets = [56, 0], sizes = [8, 32], strides = [1, 1]} : vector<64x32xf32> to vector<8x32xf32>
    %216 = arith.addf %214, %215 : vector<8x32xf32>
    %217 = tpu.concatenate %34, %60, %86, %112, %138, %164, %190, %216 in 1 : vector<8x32xf32>, vector<8x32xf32>, vector<8x32xf32>, vector<8x32xf32>, vector<8x32xf32>, vector<8x32xf32>, vector<8x32xf32>, vector<8x32xf32> -> vector<8x256xf32>
    %c0_34 = arith.constant 0 : index
    %c0_35 = arith.constant 0 : index
    %218 = vector.load %arg5[%c0_34, %c0_35] : memref<8x256xf32, #tpu.memory_space<vmem>>, vector<8x256xf32>
    tpu.vector_store %arg5[%c0_34, %c0_35], %217 {strides = array<i32>} : memref<8x256xf32, #tpu.memory_space<vmem>>, vector<8x256xf32>,
    return
  }
}

</mosaic_0001>

<bundles_post_ra>
// kernel: tpu_custom_call.1
= control target key start
LH: loop header
LB: loop body
LE: loop exit
PB: predicated region body
PF: predicated region fallthrough
CT: control target
= control target key end

     0   :  { %s1123_s0 = inlined_call_operand.vmem [shape: f32[64,32], index: 0, kind: input, shape index: {}]   ;;  %s1124_s1 = inlined_call_operand.vmem [shape: f32[32,96], index: 1, kind: input, shape index: {}]   ;;  %s1125_s2 = inlined_call_operand.vmem [shape: f32[32,96], index: 2, kind: input, shape index: {}]   ;;  %s1126_s3 = inlined_call_operand.vmem [shape: f32[1,96], index: 3, kind: input, shape index: {}]   ;;  %s1127_s4 = inlined_call_operand.vmem [shape: f32[1,32], index: 4, kind: input, shape index: {}]   ;;  %s1128_s5 = inlined_call_operand.hbm [shape: f32[8,256], index: 5, kind: output, shape index: {}]  }
   0x1   :  { %v37_v0 = vld [vmem:[%s1124_s1 + $0x18] sm:$0xff]  ;;  %v36_v1 = vld [vmem:[%s1124_s1 + $0x10] sm:$0xff]  ;;  %v35_v2 = vld [vmem:[%s1124_s1 + $0x8] sm:$0xff] }
   0x2   :  { %736 = vmatpush.msra.mxu1 %v37_v0  ;;  %79 = vmatpush.msra.mxu0 %v37_v0  ;;  %v753_v3 = vld [vmem:[%s1127_s4] ss:$0 sm:$0xff] }
   0x3   :  { %737 = vmatpush.msra.mxu2 %v37_v0  ;;  %738 = vmatpush.msra.mxu3 %v37_v0  ;;  %v34_v4 = vld [vmem:[%s1124_s1] sm:$0xff] }
   0x4   :  { %739 = vmatpush.msra.mxu1 %v36_v1  ;;  %80 = vmatpush.msra.mxu0 %v36_v1 }
   0x5   :  { %740 = vmatpush.msra.mxu2 %v36_v1  ;;  %741 = vmatpush.msra.mxu3 %v36_v1 }
   0x6   :  { %10 = vsyncpa [#allocation3], 0  ;;  %742 = vmatpush.msra.mxu1 %v35_v2  ;;  %v882_v5 = vld [vmem:[%s1123_s0 + $0x20] sm:$0xff]  ;;  %vm42_vm0 = vcmask 261120   ;;  %81 = vmatpush.msra.mxu0 %v35_v2  ;;  %v892_v7 = vld [vmem:[%s1125_s2 + $0x18] sm:$0xff]  ;;  %s829_s1 = smov 64  }
   0x7   :  { %v887_v6 = vld [vmem:[%s1123_s0] sm:$0xff]  ;;  %153 = vrot.lane.b32.xlu0 %v753_v3, %s829_s1  ;;  %743 = vmatpush.msra.mxu2 %v35_v2  ;;  %v900_v8 = vld [vmem:[%s1125_s2 + $0x10] sm:$0xff]  ;;  %v908_v9 = vld [vmem:[%s1125_s2 + $0x8] sm:$0xff]  ;;  %v830_v11 = vmov 0.0   ;;  %s833_s27 = smov [#allocation2]   ;;  %s704_s6 = sshll.u32 %s1128_s5, 4  ;;  %s705_s6 = int_to_ptr.hbm [resolvable:$true] %s704_s6 }
   0x8   :  { %745 = vmatpush.msra.mxu1 %v34_v4  ;;  %82 = vmatpush.msra.mxu0 %v34_v4  ;;  %v915_v10 = vld [vmem:[%s1125_s2] sm:$0xff]  ;;  %v951_v38 = vld [vmem:[%s1123_s0 + $0x28] sm:$0xff]  ;;  %s702_s28 = sshll.u32 %s833_s27, 4  ;;  %s703_s28 = int_to_ptr.vmem [resolvable:$true] %s702_s28 }
   0x9   :  { %717 = vmatmul.msk.f32.vlgmr.msra.gmra.mxu1 %vm42_vm0, %v882_v5  ;;  %713 = vmatmul.msk.f32.vlgmr.msra.gmra.mxu0 %vm42_vm0, %v887_v6  ;;  %v943_v17 = vld [vmem:[%s1126_s3] ss:$0 sm:$0xff]  ;;  %s831_s3 = smov 96   ;;  %v966_v44 = vld [vmem:[%s1123_s0 + $0x8] sm:$0xff] }
   0xa   :  { %123 = vmatpush.msrb.mxu1 %v892_v7  ;;  %746 = vmatpush.msra.mxu2 %v34_v4 }
   0xb   :  { %744 = vmatpush.msra.mxu3 %v35_v2  ;;  %718 = vmatmul.msk.f32.vlgmr.msra.gmra.mxu2 %vm42_vm0, %v951_v38 }
   0xc   :  { %197 = vmatpush.msrb.mxu2 %v892_v7  ;;  %124 = vmatpush.msrb.mxu1 %v900_v8 }
   0xd   :  { %747 = vmatpush.msra.mxu3 %v34_v4 }
   0xe   :  { %198 = vmatpush.msrb.mxu2 %v900_v8  ;;  %125 = vmatpush.msrb.mxu1 %v908_v9 }
   0xf   :  { %266 = vmatpush.msrb.mxu3 %v892_v7 }
  0x10   :  { %199 = vmatpush.msrb.mxu2 %v908_v9  ;;  %126 = vmatpush.msrb.mxu1 %v915_v10 }
  0x11   :  { %267 = vmatpush.msrb.mxu3 %v900_v8  ;;  %127 = vmatmul.f32.vlgmr.msrb.gmra.mxu1 %v830_v11 }
  0x12   :  { %200 = vmatpush.msrb.mxu2 %v915_v10  ;;  %335 = vmatpush.msra.mxu1 %v892_v7 }
  0x13   :  { %268 = vmatpush.msrb.mxu3 %v908_v9  ;;  %714 = vmatmul.msk.f32.gmra.mxu0 %vm42_vm0, %v966_v44 }
  0x14   :  { %336 = vmatpush.msra.mxu1 %v900_v8  ;;  %404 = vmatpush.msra.mxu2 %v892_v7 }
  0x15   :  { %269 = vmatpush.msrb.mxu3 %v915_v10 }
  0x16   :  { %337 = vmatpush.msra.mxu1 %v908_v9  ;;  %405 = vmatpush.msra.mxu2 %v900_v8 }
  0x18   :  { %338 = vmatpush.msra.mxu1 %v915_v10  ;;  %406 = vmatpush.msra.mxu2 %v908_v9 }
  0x1a   :  { %542 = vmatpush.msrb.mxu1 %v892_v7  ;;  %407 = vmatpush.msra.mxu2 %v915_v10 }
  0x1c   :  { %543 = vmatpush.msrb.mxu1 %v900_v8 }
  0x1e   :  { %544 = vmatpush.msrb.mxu1 %v908_v9 }
  0x20   :  { %545 = vmatpush.msrb.mxu1 %v915_v10 }
  0x79   :  { %v936_v13 = vpop.permute.xlu0 %153 }
  0x86   :  { %v934_v12 = vpop.f32.mrf.mxu1  ;;  %v84_v16 = vpop.f32.mrf.mxu0 }
  0x87   :  { %v85_v18 = vadd.f32 %v943_v17, %v84_v16 }
  0x8e   :  { %v128_v14 = vpop.f32.mrf.mxu1  ;;  %v975_v46 = vpop.f32.mrf.mxu2 }
  0x8f   :  { %v156_v15 = vadd.f32 %v936_v13, %v128_v14  ;;  %v131_v19 = vadd.f32 %v128_v14, %v85_v18  ;;  %v985_v14 = vld [vmem:[%s1123_s0 + $0x30] sm:$0xff] }
  0x90   :  { %v87_v49 = vpop.f32.mrf.mxu0  ;;  %719 = vmatmul.msk.f32.vlgmr.msra.gmra.mxu3 %vm42_vm0, %v985_v14 }
  0x91   :  { %158 = vrot.lane.b32.xlu0 %v156_v15, %s829_s1  ;;  %v721_v20 = vmul.f32 -1.442695, %v131_v19  ;;  %v88_v50 = vadd.f32 %v943_v17, %v87_v49  ;;  %473 = vmatpush.msra.mxu3 %v892_v7  ;;  %v994_v15 = vld [vmem:[%s1123_s0 + $0x38] sm:$0xff] }
  0x92   :  { %v1025_v49 = vld [vmem:[%s1123_s0 + $0x18] sm:$0xff] }
  0x93   :  { %755 = vpow2.f32 %v721_v20  ;;  %474 = vmatpush.msra.mxu3 %v900_v8 }
  0x95   :  { %475 = vmatpush.msra.mxu3 %v908_v9 }
  0x97   :  { %476 = vmatpush.msra.mxu3 %v915_v10 }
  0x98   :  { %720 = vmatmul.msk.f32.gmra.mxu3 %vm42_vm0, %v994_v15 }
  0x99   :  { %v756_v21 = vpop.eup %755 }
  0x9a   :  { %v135_v22 = vadd.f32 1.0, %v756_v21 }
  0x9c   :  { %757 = vrcp.f32 %v135_v22  ;;  %v147_v28 = vand.u32 2147483648, %v135_v22  ;;  %vm141_vm2 = vweird.f32 %v135_v22  ;;  %v145_v29 = vand.u32 2147483647, %v135_v22 }
  0x9e   :  { %v148_v31 = vor.u32 1.1754944e-38, %v147_v28  ;;  %vm146_vm4 = vcmp.eq.f32.partialorder %v145_v29, 8.507059e+37 }
  0xa2   :  { %v758_v23 = vpop.eup %757 }
  0xa3   :  { %v137_v24 = vmul.f32 %v758_v23, %v135_v22  ;;  %vm142_vm1 = vweird.f32 %v758_v23 }
  0xa4   :  { %vm143_vm3 = vmor %vm141_vm2, %vm142_vm1 }
  0xa5   :  { %v138_v25 = vsub.f32 1.0, %v137_v24 }
  0xa7   :  { %v139_v26 = vmul.f32 %v758_v23, %v138_v25 }
  0xa9   :  { %v140_v27 = vadd.f32 %v758_v23, %v139_v26 }
  0xab   :  { %v144_v30 = vsel %vm143_vm3, %v758_v23, %v140_v27 }
  0xac   :  { %v149_v33 = vsel %vm146_vm4, %v148_v31, %v144_v30 }
  0xad   :  { %v168_v39 = vsub.f32 1.0, %v149_v33  ;;  %v174_v41 = vmul.f32 0.0, %v149_v33 }
 0x103   :  { %v159_v32 = vpop.permute.xlu0 %158 }
 0x104   :  { %v161_v34 = vmul.f32 %v159_v32, %v149_v33 }
 0x106   :  { %163 = vrot.lane.b32.xlu1 %v161_v34, %s829_s1 }
 0x178   :  { %v164_v35 = vpop.permute.xlu1 %163 }
 0x179   :  { %v166_v36 = vadd.f32 %v164_v35, %v85_v18 }
 0x17b   :  { %759 = vtanh.f32 %v166_v36 }
 0x181   :  { %v760_v37 = vpop.eup %759 }
 0x182   :  { %170 = vrot.lane.b32.xlu1 %v760_v37, %s831_s3 }
 0x1f4   :  { %v171_v40 = vpop.permute.xlu1 %170 }
 0x1f5   :  { %v173_v42 = vmul.f32 %v171_v40, %v168_v39 }
 0x1f7   :  { %v959_v43 = vadd.f32 %v174_v41, %v173_v42 }
 0x1f9   :  { %181 = vrot.lane.b32.xlu2 %v959_v43, %s831_s3 }
 0x253   :  { %v182_v45 = vpop.permute.xlu2 %181 }
 0x254   :  { %722 = vmatmul.msk.f32.vlgmr.msrb.gmra.mxu2 %vm42_vm0, %v182_v45 }
 0x255   :  { %611 = vmatpush.msrb.mxu2 %v892_v7 }
 0x257   :  { %612 = vmatpush.msrb.mxu2 %v900_v8  ;;  %v1008_v8 = vld [vmem:[%s1123_s0 + $0x10] sm:$0xff]  ;;  %s832_s0 = smov 32  }
 0x258   :  { %715 = vmatmul.msk.f32.gmra.mxu0 %vm42_vm0, %v1008_v8 }
 0x259   :  { %613 = vmatpush.msrb.mxu2 %v908_v9 }
 0x25b   :  { %614 = vmatpush.msrb.mxu2 %v915_v10  ;;  %v1013_v10 = vpop.f32.mrf.mxu3 }
 0x260   :  { %716 = vmatmul.msk.f32.gmra.mxu0 %vm42_vm0, %v1025_v49 }
 0x263   :  { %v1015_v21 = vpop.f32.mrf.mxu3 }
 0x2d5   :  { %v90_v24 = vpop.f32.mrf.mxu0 }
 0x2d6   :  { %v91_v25 = vadd.f32 %v943_v17, %v90_v24 }
 0x2d7   :  { %v202_v47 = vpop.f32.mrf.mxu2 }
 0x2d8   :  { %v225_v48 = vadd.f32 %v202_v47, %v936_v13  ;;  %v205_v51 = vadd.f32 %v202_v47, %v88_v50 }
 0x2da   :  { %227 = vrot.lane.b32.xlu2 %v225_v48, %s829_s1  ;;  %v723_v52 = vmul.f32 -1.442695, %v205_v51 }
 0x2dc   :  { %761 = vpow2.f32 %v723_v52 }
 0x2e2   :  { %v762_v53 = vpop.eup %761 }
 0x2e3   :  { %v209_v54 = vadd.f32 1.0, %v762_v53 }
 0x2e5   :  { %763 = vrcp.f32 %v209_v54  ;;  %v221_v60 = vand.u32 2147483648, %v209_v54  ;;  %vm215_vm6 = vweird.f32 %v209_v54  ;;  %v219_v61 = vand.u32 2147483647, %v209_v54 }
 0x2e7   :  { %v222_v63 = vor.u32 1.1754944e-38, %v221_v60  ;;  %vm220_vm8 = vcmp.eq.f32.partialorder %v219_v61, 8.507059e+37 }
 0x2eb   :  { %v764_v55 = vpop.eup %763 }
 0x2ec   :  { %v211_v56 = vmul.f32 %v764_v55, %v209_v54  ;;  %vm216_vm5 = vweird.f32 %v764_v55 }
 0x2ed   :  { %vm217_vm7 = vmor %vm215_vm6, %vm216_vm5 }
 0x2ee   :  { %v212_v57 = vsub.f32 1.0, %v211_v56 }
 0x2f0   :  { %v213_v58 = vmul.f32 %v764_v55, %v212_v57 }
 0x2f2   :  { %v214_v59 = vadd.f32 %v764_v55, %v213_v58  ;;  %v93_v58 = vpop.f32.mrf.mxu0 }
 0x2f4   :  { %v218_v62 = vsel %vm217_vm7, %v764_v55, %v214_v59  ;;  %v94_v59 = vadd.f32 %v943_v17, %v93_v58 }
 0x2f5   :  { %v223_v1 = vsel %vm220_vm8, %v222_v63, %v218_v62 }
 0x2f6   :  { %v237_v16 = vsub.f32 1.0, %v223_v1  ;;  %v243_v19 = vmul.f32 %v223_v1, %v959_v43 }
 0x334   :  { %v228_v0 = vpop.permute.xlu2 %227 }
 0x335   :  { %v230_v2 = vmul.f32 %v228_v0, %v223_v1 }
 0x337   :  { %232 = vrot.lane.b32.xlu0 %v230_v2, %s829_s1 }
 0x3a9   :  { %v233_v3 = vpop.permute.xlu0 %232 }
 0x3aa   :  { %v235_v4 = vadd.f32 %v233_v3, %v88_v50 }
 0x3ac   :  { %765 = vtanh.f32 %v235_v4 }
 0x3b2   :  { %v766_v11 = vpop.eup %765 }
 0x3b3   :  { %239 = vrot.lane.b32.xlu1 %v766_v11, %s831_s3 }
 0x425   :  { %v240_v18 = vpop.permute.xlu1 %239 }
 0x426   :  { %v242_v20 = vmul.f32 %v240_v18, %v237_v16 }
 0x428   :  { %v1001_v7 = vadd.f32 %v243_v19, %v242_v20 }
 0x42a   :  { %250 = vrot.lane.b32.xlu2 %v1001_v7, %s831_s3 }
 0x484   :  { %v251_v9 = vpop.permute.xlu2 %250 }
 0x485   :  { %724 = vmatmul.msk.f32.vlgmr.msrb.gmra.mxu3 %vm42_vm0, %v251_v9 }
 0x508   :  { %v271_v22 = vpop.f32.mrf.mxu3 }
 0x509   :  { %v294_v23 = vadd.f32 %v271_v22, %v936_v13  ;;  %v274_v26 = vadd.f32 %v271_v22, %v91_v25 }
 0x50b   :  { %296 = vrot.lane.b32.xlu0 %v294_v23, %s829_s1  ;;  %v725_v27 = vmul.f32 -1.442695, %v274_v26 }
 0x50d   :  { %767 = vpow2.f32 %v725_v27 }
 0x513   :  { %v768_v28 = vpop.eup %767 }
 0x514   :  { %v278_v29 = vadd.f32 1.0, %v768_v28 }
 0x516   :  { %769 = vrcp.f32 %v278_v29  ;;  %v290_v35 = vand.u32 2147483648, %v278_v29  ;;  %vm284_vm10 = vweird.f32 %v278_v29  ;;  %v288_v36 = vand.u32 2147483647, %v278_v29 }
 0x518   :  { %v291_v39 = vor.u32 1.1754944e-38, %v290_v35  ;;  %vm289_vm12 = vcmp.eq.f32.partialorder %v288_v36, 8.507059e+37 }
 0x51c   :  { %v770_v30 = vpop.eup %769 }
 0x51d   :  { %v280_v31 = vmul.f32 %v770_v30, %v278_v29  ;;  %vm285_vm9 = vweird.f32 %v770_v30 }
 0x51e   :  { %vm286_vm11 = vmor %vm284_vm10, %vm285_vm9 }
 0x51f   :  { %v281_v32 = vsub.f32 1.0, %v280_v31 }
 0x521   :  { %v282_v33 = vmul.f32 %v770_v30, %v281_v32 }
 0x523   :  { %v283_v34 = vadd.f32 %v770_v30, %v282_v33 }
 0x525   :  { %v287_v37 = vsel %vm286_vm11, %v770_v30, %v283_v34  ;;  %v97_v34 = vadd.f32 %v943_v17, %v934_v12 }
 0x526   :  { %v292_v41 = vsel %vm289_vm12, %v291_v39, %v287_v37 }
 0x527   :  { %v306_v50 = vsub.f32 1.0, %v292_v41  ;;  %v312_v52 = vmul.f32 %v292_v41, %v1001_v7 }
 0x57d   :  { %v297_v40 = vpop.permute.xlu0 %296 }
 0x57e   :  { %v299_v42 = vmul.f32 %v297_v40, %v292_v41 }
 0x580   :  { %301 = vrot.lane.b32.xlu1 %v299_v42, %s829_s1 }
 0x5f2   :  { %v302_v45 = vpop.permute.xlu1 %301 }
 0x5f3   :  { %v304_v47 = vadd.f32 %v302_v45, %v91_v25 }
 0x5f5   :  { %771 = vtanh.f32 %v304_v47 }
 0x5fb   :  { %v772_v48 = vpop.eup %771 }
 0x5fc   :  { %308 = vrot.lane.b32.xlu2 %v772_v48, %s831_s3 }
 0x656   :  { %v309_v51 = vpop.permute.xlu2 %308 }
 0x657   :  { %v311_v53 = vmul.f32 %v309_v51, %v306_v50 }
 0x659   :  { %v1030_v54 = vadd.f32 %v312_v52, %v311_v53 }
 0x65b   :  { %319 = vrot.lane.b32.xlu0 %v1030_v54, %s831_s3 }
 0x6cd   :  { %v320_v55 = vpop.permute.xlu0 %319 }
 0x6ce   :  { %726 = vmatmul.msk.f32.vlgmr.msra.gmra.mxu1 %vm42_vm0, %v320_v55 }
 0x74b   :  { %v340_v56 = vpop.f32.mrf.mxu1 }
 0x74c   :  { %v363_v57 = vadd.f32 %v340_v56, %v936_v13  ;;  %v343_v60 = vadd.f32 %v340_v56, %v94_v59 }
 0x74e   :  { %365 = vrot.lane.b32.xlu1 %v363_v57, %s829_s1  ;;  %v727_v61 = vmul.f32 -1.442695, %v343_v60 }
 0x750   :  { %773 = vpow2.f32 %v727_v61 }
 0x756   :  { %v774_v62 = vpop.eup %773 }
 0x757   :  { %v347_v63 = vadd.f32 1.0, %v774_v62 }
 0x759   :  { %775 = vrcp.f32 %v347_v63  ;;  %v359_v11 = vand.u32 2147483648, %v347_v63  ;;  %vm353_vm14 = vweird.f32 %v347_v63  ;;  %v357_v16 = vand.u32 2147483647, %v347_v63 }
 0x75b   :  { %v360_v19 = vor.u32 1.1754944e-38, %v359_v11  ;;  %vm358_vm1 = vcmp.eq.f32.partialorder %v357_v16, 8.507059e+37 }
 0x75f   :  { %v776_v0 = vpop.eup %775 }
 0x760   :  { %v349_v1 = vmul.f32 %v776_v0, %v347_v63  ;;  %vm354_vm13 = vweird.f32 %v776_v0 }
 0x761   :  { %vm355_vm15 = vmor %vm353_vm14, %vm354_vm13 }
 0x762   :  { %v350_v2 = vsub.f32 1.0, %v349_v1 }
 0x764   :  { %v351_v3 = vmul.f32 %v776_v0, %v350_v2 }
 0x766   :  { %v352_v4 = vadd.f32 %v776_v0, %v351_v3  ;;  %v100_v3 = vadd.f32 %v943_v17, %v975_v46 }
 0x768   :  { %v356_v18 = vsel %vm355_vm15, %v776_v0, %v352_v4 }
 0x769   :  { %v361_v9 = vsel %vm358_vm1, %v360_v19, %v356_v18 }
 0x76a   :  { %v375_v26 = vsub.f32 1.0, %v361_v9  ;;  %v381_v28 = vmul.f32 %v361_v9, %v1030_v54 }
 0x7c0   :  { %v366_v20 = vpop.permute.xlu1 %365 }
 0x7c1   :  { %v368_v22 = vmul.f32 %v366_v20, %v361_v9 }
 0x7c3   :  { %370 = vrot.lane.b32.xlu2 %v368_v22, %s829_s1 }
 0x81d   :  { %v371_v23 = vpop.permute.xlu2 %370 }
 0x81e   :  { %v373_v24 = vadd.f32 %v371_v23, %v94_v59 }
 0x820   :  { %777 = vtanh.f32 %v373_v24 }
 0x826   :  { %v778_v25 = vpop.eup %777 }
 0x827   :  { %377 = vrot.lane.b32.xlu0 %v778_v25, %s831_s3 }
 0x899   :  { %v378_v27 = vpop.permute.xlu0 %377 }
 0x89a   :  { %v380_v29 = vmul.f32 %v378_v27, %v375_v26 }
 0x89c   :  { %v1041_v30 = vadd.f32 %v381_v28, %v380_v29 }
 0x89e   :  { %388 = vrot.lane.b32.xlu1 %v1041_v30, %s831_s3 }
 0x910   :  { %v389_v31 = vpop.permute.xlu1 %388 }
 0x911   :  { %728 = vmatmul.msk.f32.vlgmr.msra.gmra.mxu2 %vm42_vm0, %v389_v31 }
 0x994   :  { %v409_v32 = vpop.f32.mrf.mxu2 }
 0x995   :  { %v432_v33 = vadd.f32 %v409_v32, %v936_v13  ;;  %v412_v35 = vadd.f32 %v409_v32, %v97_v34 }
 0x997   :  { %434 = vrot.lane.b32.xlu2 %v432_v33, %s829_s1  ;;  %v729_v36 = vmul.f32 -1.442695, %v412_v35 }
 0x999   :  { %779 = vpow2.f32 %v729_v36 }
 0x99f   :  { %v780_v37 = vpop.eup %779 }
 0x9a0   :  { %v416_v39 = vadd.f32 1.0, %v780_v37 }
 0x9a2   :  { %781 = vrcp.f32 %v416_v39  ;;  %v428_v48 = vand.u32 2147483648, %v416_v39  ;;  %vm422_vm3 = vweird.f32 %v416_v39  ;;  %v426_v50 = vand.u32 2147483647, %v416_v39 }
 0x9a4   :  { %v429_v52 = vor.u32 1.1754944e-38, %v428_v48  ;;  %vm427_vm5 = vcmp.eq.f32.partialorder %v426_v50, 8.507059e+37 }
 0x9a8   :  { %v782_v40 = vpop.eup %781 }
 0x9a9   :  { %v418_v41 = vmul.f32 %v782_v40, %v416_v39  ;;  %vm423_vm2 = vweird.f32 %v782_v40 }
 0x9aa   :  { %vm424_vm4 = vmor %vm422_vm3, %vm423_vm2  ;;  %vm688_vm3 = vcmask 523264  }
 0x9ab   :  { %v419_v42 = vsub.f32 1.0, %v418_v41 }
 0x9ad   :  { %v420_v45 = vmul.f32 %v782_v40, %v419_v42 }
 0x9af   :  { %v421_v47 = vadd.f32 %v782_v40, %v420_v45  ;;  %v103_v45 = vadd.f32 %v943_v17, %v1013_v10 }
 0x9b1   :  { %v425_v51 = vsel %vm424_vm4, %v782_v40, %v421_v47  ;;  %vm690_vm4 = vcmask 785408  }
 0x9b2   :  { %v430_v53 = vsel %vm427_vm5, %v429_v52, %v425_v51 }
 0x9b3   :  { %v444_v59 = vsub.f32 1.0, %v430_v53  ;;  %v450_v61 = vmul.f32 %v430_v53, %v1041_v30 }
 0x9f1   :  { %v435_v12 = vpop.permute.xlu2 %434 }
 0x9f2   :  { %v437_v55 = vmul.f32 %v435_v12, %v430_v53 }
 0x9f4   :  { %439 = vrot.lane.b32.xlu0 %v437_v55, %s829_s1 }
 0xa66   :  { %v440_v56 = vpop.permute.xlu0 %439 }
 0xa67   :  { %v442_v57 = vadd.f32 %v440_v56, %v97_v34 }
 0xa69   :  { %783 = vtanh.f32 %v442_v57 }
 0xa6f   :  { %v784_v58 = vpop.eup %783 }
 0xa70   :  { %446 = vrot.lane.b32.xlu1 %v784_v58, %s831_s3 }
 0xae2   :  { %v447_v60 = vpop.permute.xlu1 %446 }
 0xae3   :  { %v449_v62 = vmul.f32 %v447_v60, %v444_v59 }
 0xae5   :  { %v1053_v63 = vadd.f32 %v450_v61, %v449_v62 }
 0xae7   :  { %457 = vrot.lane.b32.xlu2 %v1053_v63, %s831_s3 }
 0xb41   :  { %v458_v0 = vpop.permute.xlu2 %457 }
 0xb42   :  { %730 = vmatmul.msk.f32.vlgmr.msra.gmra.mxu3 %vm42_vm0, %v458_v0 }
 0xbc5   :  { %v478_v1 = vpop.f32.mrf.mxu3 }
 0xbc6   :  { %v501_v2 = vadd.f32 %v478_v1, %v936_v13  ;;  %v481_v4 = vadd.f32 %v478_v1, %v100_v3 }
 0xbc8   :  { %503 = vrot.lane.b32.xlu0 %v501_v2, %s829_s1  ;;  %v731_v11 = vmul.f32 -1.442695, %v481_v4 }
 0xbca   :  { %785 = vpow2.f32 %v731_v11 }
 0xbd0   :  { %v786_v16 = vpop.eup %785 }
 0xbd1   :  { %v485_v18 = vadd.f32 1.0, %v786_v16 }
 0xbd3   :  { %787 = vrcp.f32 %v485_v18  ;;  %v497_v24 = vand.u32 2147483648, %v485_v18  ;;  %vm491_vm7 = vweird.f32 %v485_v18  ;;  %v495_v25 = vand.u32 2147483647, %v485_v18 }
 0xbd5   :  { %v498_v27 = vor.u32 1.1754944e-38, %v497_v24  ;;  %vm496_vm9 = vcmp.eq.f32.partialorder %v495_v25, 8.507059e+37 }
 0xbd9   :  { %v788_v19 = vpop.eup %787 }
 0xbda   :  { %v487_v20 = vmul.f32 %v788_v19, %v485_v18  ;;  %vm492_vm6 = vweird.f32 %v788_v19 }
 0xbdb   :  { %vm493_vm8 = vmor %vm491_vm7, %vm492_vm6 }
 0xbdc   :  { %v488_v9 = vsub.f32 1.0, %v487_v20 }
 0xbde   :  { %v489_v22 = vmul.f32 %v788_v19, %v488_v9 }
 0xbe0   :  { %v490_v23 = vadd.f32 %v788_v19, %v489_v22 }
 0xbe2   :  { %v494_v26 = vsel %vm493_vm8, %v788_v19, %v490_v23 }
 0xbe3   :  { %v499_v28 = vsel %vm496_vm9, %v498_v27, %v494_v26 }
 0xbe4   :  { %v513_v34 = vsub.f32 1.0, %v499_v28  ;;  %v519_v36 = vmul.f32 %v499_v28, %v1053_v63 }
 0xc3a   :  { %v504_v46 = vpop.permute.xlu0 %503 }
 0xc3b   :  { %v506_v29 = vmul.f32 %v504_v46, %v499_v28 }
 0xc3d   :  { %508 = vrot.lane.b32.xlu1 %v506_v29, %s829_s1 }
 0xcaf   :  { %v509_v31 = vpop.permute.xlu1 %508 }
 0xcb0   :  { %v511_v32 = vadd.f32 %v509_v31, %v100_v3 }
 0xcb2   :  { %789 = vtanh.f32 %v511_v32 }
 0xcb8   :  { %v790_v33 = vpop.eup %789 }
 0xcb9   :  { %515 = vrot.lane.b32.xlu2 %v790_v33, %s831_s3 }
 0xd13   :  { %v516_v35 = vpop.permute.xlu2 %515 }
 0xd14   :  { %v518_v37 = vmul.f32 %v516_v35, %v513_v34 }
 0xd16   :  { %v1065_v39 = vadd.f32 %v519_v36, %v518_v37 }
 0xd18   :  { %526 = vrot.lane.b32.xlu0 %v1065_v39, %s831_s3 }
 0xd8a   :  { %v527_v40 = vpop.permute.xlu0 %526 }
 0xd8b   :  { %732 = vmatmul.msk.f32.vlgmr.msrb.gmra.mxu1 %vm42_vm0, %v527_v40 }
 0xe08   :  { %v547_v41 = vpop.f32.mrf.mxu1 }
 0xe09   :  { %v570_v42 = vadd.f32 %v547_v41, %v936_v13  ;;  %v550_v47 = vadd.f32 %v547_v41, %v103_v45 }
 0xe0b   :  { %572 = vrot.lane.b32.xlu1 %v570_v42, %s829_s1  ;;  %v733_v48 = vmul.f32 -1.442695, %v550_v47 }
 0xe0d   :  { %791 = vpow2.f32 %v733_v48 }
 0xe13   :  { %v792_v50 = vpop.eup %791 }
 0xe14   :  { %v554_v51 = vadd.f32 1.0, %v792_v50 }
 0xe16   :  { %793 = vrcp.f32 %v554_v51  ;;  %v566_v57 = vand.u32 2147483648, %v554_v51  ;;  %vm560_vm11 = vweird.f32 %v554_v51  ;;  %v564_v58 = vand.u32 2147483647, %v554_v51 }
 0xe18   :  { %v567_v60 = vor.u32 1.1754944e-38, %v566_v57  ;;  %vm565_vm13 = vcmp.eq.f32.partialorder %v564_v58, 8.507059e+37 }
 0xe1c   :  { %v794_v52 = vpop.eup %793 }
 0xe1d   :  { %v556_v12 = vmul.f32 %v794_v52, %v554_v51  ;;  %vm561_vm10 = vweird.f32 %v794_v52 }
 0xe1e   :  { %vm562_vm12 = vmor %vm560_vm11, %vm561_vm10 }
 0xe1f   :  { %v557_v53 = vsub.f32 1.0, %v556_v12 }
 0xe21   :  { %v558_v55 = vmul.f32 %v794_v52, %v557_v53 }
 0xe23   :  { %v559_v56 = vadd.f32 %v794_v52, %v558_v55 }
 0xe25   :  { %v563_v59 = vsel %vm562_vm12, %v794_v52, %v559_v56 }
 0xe26   :  { %v568_v61 = vsel %vm565_vm13, %v567_v60, %v563_v59 }
 0xe27   :  { %v582_v3 = vsub.f32 1.0, %v568_v61  ;;  %v588_v11 = vmul.f32 %v568_v61, %v1065_v39 }
 0xe7d   :  { %v573_v10 = vpop.permute.xlu1 %572 }
 0xe7e   :  { %v575_v62 = vmul.f32 %v573_v10, %v568_v61 }
 0xe80   :  { %577 = vrot.lane.b32.xlu2 %v575_v62, %s829_s1 }
 0xeda   :  { %v578_v0 = vpop.permute.xlu2 %577 }
 0xedb   :  { %v580_v1 = vadd.f32 %v578_v0, %v103_v45 }
 0xedd   :  { %795 = vtanh.f32 %v580_v1 }
 0xee3   :  { %v796_v2 = vpop.eup %795 }
 0xee4   :  { %584 = vrot.lane.b32.xlu0 %v796_v2, %s831_s3 }
 0xf56   :  { %v585_v4 = vpop.permute.xlu0 %584 }
 0xf57   :  { %v587_v16 = vmul.f32 %v585_v4, %v582_v3 }
 0xf59   :  { %v1077_v18 = vadd.f32 %v588_v11, %v587_v16 }
 0xf5b   :  { %595 = vrot.lane.b32.xlu1 %v1077_v18, %s831_s3 }
 0xf63   :  { %314 = vrot.lane.b32.xlu1 %v1008_v8, %s832_s0  ;;  %v106_v8 = vadd.f32 %v943_v17, %v1015_v21 }
 0xfcd   :  { %v596_v19 = vpop.permute.xlu1 %595 }
 0xfce   :  { %734 = vmatmul.msk.f32.vlgmr.msrb.gmra.mxu2 %vm42_vm0, %v596_v19 }
 0xfd5   :  { %v315_v32 = vpop.permute.xlu1 %314 }
 0xfd6   :  { %v317_v33 = vadd.f32 %v315_v32, %v1030_v54 }
0x1051   :  { %v616_v20 = vpop.f32.mrf.mxu2 }
0x1052   :  { %v639_v9 = vadd.f32 %v616_v20, %v936_v13  ;;  %v619_v22 = vadd.f32 %v616_v20, %v106_v8 }
0x1054   :  { %641 = vrot.lane.b32.xlu2 %v639_v9, %s829_s1  ;;  %v735_v23 = vmul.f32 -1.442695, %v619_v22 }
0x1056   :  { %797 = vpow2.f32 %v735_v23 }
0x105c   :  { %176 = vrot.lane.b32.xlu2 %v887_v6, %s832_s0  ;;  %v798_v24 = vpop.eup %797 }
0x105d   :  { %v623_v25 = vadd.f32 1.0, %v798_v24 }
0x105f   :  { %799 = vrcp.f32 %v623_v25  ;;  %v635_v28 = vand.u32 2147483648, %v623_v25  ;;  %vm629_vm15 = vweird.f32 %v623_v25 }
0x1061   :  { %v636_v29 = vor.u32 1.1754944e-38, %v635_v28 }
0x1064   :  { %590 = vrot.lane.b32.xlu2 %v985_v14, %s832_s0  ;;  %v633_v14 = vand.u32 2147483647, %v623_v25 }
0x1065   :  { %v800_v13 = vpop.eup %799 }
0x1066   :  { %v625_v26 = vmul.f32 %v800_v13, %v623_v25  ;;  %vm630_vm14 = vweird.f32 %v800_v13  ;;  %vm634_vm2 = vcmp.eq.f32.partialorder %v633_v14, 8.507059e+37 }
0x1067   :  { %vm631_vm1 = vmor %vm629_vm15, %vm630_vm14 }
0x1068   :  { %v626_v27 = vsub.f32 1.0, %v625_v26 }
0x106a   :  { %v627_v46 = vmul.f32 %v800_v13, %v626_v27 }
0x106c   :  { %245 = vrot.lane.b32.xlu2 %v966_v44, %s832_s0  ;;  %v628_v6 = vadd.f32 %v800_v13, %v627_v46 }
0x106e   :  { %v632_v44 = vsel %vm631_vm1, %v800_v13, %v628_v6 }
0x106f   :  { %v637_v21 = vsel %vm634_vm2, %v636_v29, %v632_v44 }
0x1070   :  { %v651_v50 = vsub.f32 1.0, %v637_v21  ;;  %v657_v52 = vmul.f32 %v637_v21, %v1077_v18 }
0x10ae   :  { %v642_v17 = vpop.permute.xlu2 %641 }
0x10af   :  { %v644_v31 = vmul.f32 %v642_v17, %v637_v21 }
0x10b1   :  { %646 = vrot.lane.b32.xlu0 %v644_v31, %s829_s1 }
0x10b9   :  { %452 = vrot.lane.b32.xlu0 %v882_v5, %s832_s0 }
0x10c1   :  { %383 = vrot.lane.b32.xlu0 %v1025_v49, %s832_s0 }
0x10c9   :  { %521 = vrot.lane.b32.xlu0 %v951_v38, %s832_s0  ;;  %v177_v38 = vpop.permute.xlu2 %176 }
0x10ca   :  { %v179_v54 = vadd.f32 %v177_v38, %v959_v43 }
0x10d1   :  { %668 = vrot.lane.b32.xlu0 %v317_v33, %s832_s0  ;;  %v591_v41 = vpop.permute.xlu2 %590 }
0x10d9   :  { %v246_v42 = vpop.permute.xlu2 %245 }
0x10da   :  { %v248_v55 = vadd.f32 %v246_v42, %v1001_v7 }
0x1123   :  { %v647_v34 = vpop.permute.xlu0 %646 }
0x1124   :  { %v649_v35 = vadd.f32 %v647_v34, %v106_v8 }
0x1126   :  { %801 = vtanh.f32 %v649_v35 }
0x112b   :  { %v453_v36 = vpop.permute.xlu0 %452 }
0x112c   :  { %v802_v37 = vpop.eup %801  ;;  %v455_v40 = vadd.f32 %v453_v36, %v1053_v63  ;;  %v593_v63 = vadd.f32 %v591_v41, %v1077_v18 }
0x112d   :  { %653 = vrot.lane.b32.xlu1 %v802_v37, %s831_s3 }
0x112e   :  { %676 = vrot.lane.b32.xlu2 %v455_v40, %s831_s3 }
0x1133   :  { %v384_v5 = vpop.permute.xlu0 %383 }
0x1134   :  { %v386_v49 = vadd.f32 %v384_v5, %v1041_v30 }
0x1135   :  { %659 = vrot.lane.b32.xlu1 %v994_v15, %s832_s0 }
0x1136   :  { %672 = vrot.lane.b32.xlu2 %v386_v49, %s829_s1 }
0x113b   :  { %v522_v45 = vpop.permute.xlu0 %521 }
0x113c   :  { %v524_v47 = vadd.f32 %v522_v45, %v1065_v39 }
0x113d   :  { %664 = vrot.lane.b32.xlu1 %v179_v54, %s831_s3 }
0x1143   :  { %v669_v57 = vpop.permute.xlu0 %668 }
0x1145   :  { %680 = vrot.lane.b32.xlu1 %v593_v63, %s832_s0 }
0x1188   :  { %v677_v30 = vpop.permute.xlu2 %676 }
0x1189   :  { %v692_v48 = vsel %vm42_vm0, %v677_v30, %v524_v47 }
0x1190   :  { %v673_v58 = vpop.permute.xlu2 %672 }
0x119f   :  { %v654_v15 = vpop.permute.xlu1 %653 }
0x11a0   :  { %v656_v51 = vmul.f32 %v654_v15, %v651_v50 }
0x11a2   :  { %v658_v43 = vadd.f32 %v657_v52, %v656_v51 }
0x11a7   :  { %v660_v12 = vpop.permute.xlu1 %659 }
0x11a8   :  { %v662_v53 = vadd.f32 %v660_v12, %v658_v43 }
0x11aa   :  { %684 = vrot.lane.b32.xlu0 %v662_v53, %s829_s1 }
0x11af   :  { %v665_v56 = vpop.permute.xlu1 %664 }
0x11b0   :  { %v687_v39 = vsel %vm42_vm0, %v665_v56, %v248_v55 }
0x11b1   :  { %v689_v59 = vsel %vm688_vm3, %v687_v39, %v669_v57 }
0x11b2   :  { %v691_v60 = vsel %vm690_vm4, %v689_v59, %v673_v58 }
0x11b3   :  { %695 = vst [vmem:[#allocation2] sm:$0xff] %v691_v60 }
0x11b7   :  { %v681_v10 = vpop.permute.xlu1 %680 }
0x11b8   :  { %v693_v61 = vsel %vm688_vm3, %v692_v48, %v681_v10 }
0x121c   :  { %v685_v62 = vpop.permute.xlu0 %684 }
0x121d   :  { %v694_v7 = vsel %vm690_vm4, %v693_v61, %v685_v62 }
0x121e   :  { %696 = vst [vmem:[#allocation2 + $0x8] sm:$0xff] %v694_v7 }
0x121f   :  { %707 = dma.vmem_to_hbm [thread:$0]  %s703_s28, 256, %s705_s6, [#allocation3]  }
0x1220   :  { %827 = dma.done.wait [#allocation3], 256  }
0x1221   :  { %828 = vsyncadd [#allocation3], 4294967040 }
0x1222   :  { %712 = vsyncpa [#allocation3], 1 }

</bundles_post_ra>
